<compile_context>
chip_gen: v6e
topology: v6e:2x2x1
jax: 0.10.0
libtpu: 0.0.40
codegen_flags: <defaults>
</compile_context>

<pallas_src>
import math

import jax
import jax.numpy as jnp
from jax.experimental import pallas as pl
from jax.experimental.pallas import tpu as pltpu

_LOG_0P2 = math.log(0.2)


def _sample_model_kernel(a_ref, b_ref, o_ref):
    a = a_ref[...]
    b = b_ref[...]
    # run_magic(b): -100 where exp(b) < 0.2 else 100  ==  compare vs log(0.2).
    magic = jnp.where(b < jnp.float32(_LOG_0P2),
                      jnp.float32(-100.0), jnp.float32(100.0))
    o_ref[...] = (a * jnp.float32(2.0) + magic).astype(o_ref.dtype)


def _round_down(x, m):
    return (x // m) * m


def _choose_tile(R, C, itemsize, tile_bytes):
    """Pick a lane-dense, multi-MiB tile; prefer full-width row slabs."""
    row_bytes = C * itemsize
    if 8 * row_bytes <= tile_bytes:
        tile_c = C                                   # full width -> unmasked vst
        rows = tile_bytes // row_bytes
        tile_r = R if rows >= R else max(8, _round_down(rows, 8))
    else:                                            # extremely wide rows: tile lanes too
        tile_r = 8
        cols = tile_bytes // (8 * itemsize)
        tile_c = C if cols >= C else max(128, _round_down(cols, 128))
    return tile_r, tile_c


def sample_model_forward(a, b, *, target_tile_bytes=4 * 1024 * 1024,
                         single_block_threshold=1 * 1024 * 1024):
    """a * 2 + run_magic(b); a and b are 2-D with identical shapes."""
    assert a.shape == b.shape and a.ndim == 2
    R, C = a.shape
    itemsize = jnp.dtype(a.dtype).itemsize
    out_shape = jax.ShapeDtypeStruct((R, C), a.dtype)

    total_bytes = R * C * itemsize
    if total_bytes <= single_block_threshold:
        # Tiny input: one block covering the whole array, no grid/pipeline overhead.
        full = pl.BlockSpec((R, C), lambda: (0, 0))
        return pl.pallas_call(
            _sample_model_kernel,
            out_shape=out_shape,
            in_specs=[full, full],
            out_specs=full,
        )(a, b)

    tile_r, tile_c = _choose_tile(R, C, itemsize, target_tile_bytes)
    grid = (pl.cdiv(R, tile_r), pl.cdiv(C, tile_c))
    spec = pl.BlockSpec((tile_r, tile_c), lambda i, j: (i, j))

    # 3 arrays x 2 pipeline buffers x tile must fit scoped VMEM; raise the limit
    # (v5e defaults to 16 MiB, v6e/v7x to 32 MiB) but cap at 48 MiB so the
    # config also leaves headroom on v7x's 64 MiB physical VMEM.
    buffer_bytes = 6 * tile_r * tile_c * itemsize
    vmem_limit = min(48 * 1024 * 1024,
                     max(32 * 1024 * 1024, buffer_bytes + 8 * 1024 * 1024))

    return pl.pallas_call(
        _sample_model_kernel,
        out_shape=out_shape,
        grid_spec=pltpu.PrefetchScalarGridSpec(
            num_scalar_prefetch=0,
            grid=grid,
            in_specs=[spec, spec],
            out_specs=spec,
        ),
        compiler_params=pltpu.CompilerParams(
            dimension_semantics=("parallel", "parallel"),
            vmem_limit_bytes=vmem_limit,
        ),
    )(a, b)


def sample_model_ref(a, b):
    magic = jnp.where(jnp.exp(b.astype(jnp.float32)) < 0.2, -100.0, 100.0)
    return (a.astype(jnp.float32) * 2.0 + magic).astype(a.dtype)


def _check(shape, key):
    ka, kb = jax.random.split(key)
    a = jax.random.normal(ka, shape, dtype=jnp.float32)
    b = jax.random.normal(kb, shape, dtype=jnp.float32) * 2.0  # spread around log(0.2)
    out = sample_model_forward(a, b)
    jax.block_until_ready(out)
    ref = sample_model_ref(a, b)
    assert out.shape == ref.shape and out.dtype == ref.dtype
    assert jnp.allclose(out, ref, atol=1e-5, rtol=1e-5), f"mismatch vs reference at {shape}"


if __name__ == "__main__":
    key = jax.random.PRNGKey(0)
    k1, k2, k3 = jax.random.split(key, 3)
    _check((16, 128), k1)       # tiny 2-D input: single-block (no-grid) path
    _check((300, 1000), k2)     # odd, non-(8,128)-aligned shape: full-extent blocks
    _check((1024, 2048), k3)    # tiled path: 4 MiB full-width row slabs, 2-step grid
    print("KERNEL_OK")
</pallas_src>

<mosaic_0001>
module attributes {stable_mosaic.version = 11 : i64} {
  func.func @_sample_model_kernel(%arg0: memref<16x128xf32, #tpu.memory_space<vmem>>, %arg1: memref<16x128xf32, #tpu.memory_space<vmem>>, %arg2: memref<16x128xf32, #tpu.memory_space<vmem>>) attributes {dimension_semantics = [], scalar_prefetch = 0 : i64, scratch_operands = 0 : i64, tpu.core_type = #tpu.core_type<tc>} {
    %c0 = arith.constant 0 : index
    %c0_0 = arith.constant 0 : index
    %0 = vector.load %arg0[%c0, %c0_0] : memref<16x128xf32, #tpu.memory_space<vmem>>, vector<16x128xf32>
    %c0_1 = arith.constant 0 : index
    %c0_2 = arith.constant 0 : index
    %1 = vector.load %arg1[%c0_1, %c0_2] : memref<16x128xf32, #tpu.memory_space<vmem>>, vector<16x128xf32>
    %cst = arith.constant -1.60943794 : f32
    %2 = vector.broadcast %cst : f32 to vector<16x128xf32>
    %3 = arith.cmpf olt, %1, %2 : vector<16x128xf32>
    %cst_3 = arith.constant -1.000000e+02 : f32
    %cst_4 = arith.constant 1.000000e+02 : f32
    %4 = vector.broadcast %cst_3 : f32 to vector<16x128xf32>
    %5 = vector.broadcast %cst_4 : f32 to vector<16x128xf32>
    %6 = arith.select %3, %4, %5 : vector<16x128xi1>, vector<16x128xf32>
    %cst_5 = arith.constant 2.000000e+00 : f32
    %7 = vector.broadcast %cst_5 : f32 to vector<16x128xf32>
    %8 = arith.mulf %0, %7 : vector<16x128xf32>
    %9 = arith.addf %8, %6 : vector<16x128xf32>
    %c0_6 = arith.constant 0 : index
    %c0_7 = arith.constant 0 : index
    %10 = vector.load %arg2[%c0_6, %c0_7] : memref<16x128xf32, #tpu.memory_space<vmem>>, vector<16x128xf32>
    tpu.vector_store %arg2[%c0_6, %c0_7], %9 {strides = array<i32>} : memref<16x128xf32, #tpu.memory_space<vmem>>, vector<16x128xf32>,
    return
  }
}

</mosaic_0001>

<bundles_post_ra>
// kernel: tpu_custom_call.1
= control target key start
LH: loop header
LB: loop body
LE: loop exit
PB: predicated region body
PF: predicated region fallthrough
CT: control target
= control target key end

     0   :  { %7 = vsyncpa [#allocation3], 0  ;;  %s183_s0 = inlined_call_operand.hbm [shape: f32[16,128], index: 0, kind: input, shape index: {}]   ;;  %s184_s1 = inlined_call_operand.hbm [shape: f32[16,128], index: 1, kind: input, shape index: {}]   ;;  %s185_s2 = inlined_call_operand.hbm [shape: f32[16,128], index: 2, kind: output, shape index: {}]  }
   0x1   :  { %8 = vsyncpa [#allocation6], 0 }
   0x2   :  { %9 = vsyncpa [#allocation4], 0  ;;  %s144_s9 = smov [#allocation2]  }
   0x3   :  { %s15_s10 = sshll.u32 %s144_s9, 4  ;;  %s16_s10 = int_to_ptr.vmem [resolvable:$true] %s15_s10 }
   0x4   :  { %s86_s11 = scalar_lea.vmem %s16_s10, 256  ;;  %p91_p1 = scmp.lt.s32.totalorder %s16_s10, %s16_s10 }
   0x5   :  { %p87_p0 = scmp.ne.s32.totalorder %s16_s10, %s86_s11  ;;  %p92_p2 = scmp.lt.s32.totalorder %s86_s11, %s86_s11 }
   0x7   :  { %p93_p3 = por %p92_p2, %p91_p1 }
   0x9   :  { %p94_p4 = pnand %p93_p3, %p87_p0 }
   0xb   :  { %97 = shalt.err (!%p94_p4)
}
   0xc   :  { %s145_s12 = smov 128   ;;  %s146_s13 = smov 8  }
   0xd   :  { %21 = dma.hbm_to_vmem [thread:$0]  %s183_s0, 256, %s16_s10, [#allocation3], %s145_s12, %s145_s12, %s146_s13  }
   0xe   :  { %s147_s16 = smov [#allocation5]  }
   0xf   :  { %s27_s17 = sshll.u32 %s147_s16, 4  ;;  %s28_s17 = int_to_ptr.vmem [resolvable:$true] %s27_s17 }
  0x10   :  { %s106_s18 = scalar_lea.vmem %s28_s17, 256  ;;  %p111_p6 = scmp.lt.s32.totalorder %s28_s17, %s28_s17 }
  0x11   :  { %p107_p5 = scmp.ne.s32.totalorder %s28_s17, %s106_s18  ;;  %p112_p7 = scmp.lt.s32.totalorder %s106_s18, %s106_s18 }
  0x13   :  { %p113_p8 = por %p112_p7, %p111_p6 }
  0x15   :  { %p114_p9 = pnand %p113_p8, %p107_p5 }
  0x17   :  { %117 = shalt.err (!%p114_p9)
}
  0x18   :  { %33 = dma.hbm_to_vmem [thread:$0]  %s184_s1, 256, %s28_s17, [#allocation6], %s145_s12, %s145_s12, %s146_s13  }
  0x19   :  { %138 = dma.done.wait [#allocation3], 256  }
  0x1a   :  { %139 = vsyncadd [#allocation3], 4294967040 }
  0x1b   :  { %140 = dma.done.wait [#allocation6], 256  }
  0x1c   :  { %141 = vsyncadd [#allocation6], 4294967040  ;;  %v40_v0 = vld [vmem:[#allocation2] sm:$0xff]  ;;  %v42_v1 = vld [vmem:[#allocation5] sm:$0xff]  ;;  %s148_s0 = smov [#allocation7]   ;;  %v149_v6 = vmov 100.0  }
  0x1d   :  { %v41_v2 = vld [vmem:[#allocation2 + $0x8] sm:$0xff]  ;;  %vm44_vm0 = vcmp.lt.f32.partialorder %v42_v1, -1.609438  ;;  %v48_v3 = vmul.f32 2.0, %v40_v0  ;;  %v43_v4 = vld [vmem:[#allocation5 + $0x8] sm:$0xff]  ;;  %s59_s21 = sshll.u32 %s148_s0, 4  ;;  %s60_s21 = int_to_ptr.vmem [resolvable:$true] %s59_s21 }
  0x1e   :  { %v49_v5 = vmul.f32 2.0, %v41_v2  ;;  %v46_v7 = vsel %vm44_vm0, -100.0, %v149_v6  ;;  %vm45_vm1 = vcmp.lt.f32.partialorder %v43_v4, -1.609438  ;;  %s118_s1 = scalar_lea.vmem %s60_s21, 256  ;;  %p123_p11 = scmp.lt.s32.totalorder %s60_s21, %s60_s21 }
  0x1f   :  { %v50_v8 = vadd.f32 %v48_v3, %v46_v7  ;;  %v47_v9 = vsel %vm45_vm1, -100.0, %v149_v6  ;;  %p119_p10 = scmp.ne.s32.totalorder %s60_s21, %s118_s1  ;;  %p124_p12 = scmp.lt.s32.totalorder %s118_s1, %s118_s1 }
  0x20   :  { %v51_v10 = vadd.f32 %v49_v5, %v47_v9 }
  0x21   :  { %52 = vst [vmem:[#allocation7] sm:$0xff] %v50_v8  ;;  %p125_p13 = por %p124_p12, %p123_p11 }
  0x22   :  { %53 = vst [vmem:[#allocation7 + $0x8] sm:$0xff] %v51_v10 }
  0x23   :  { %p126_p0 = pnand %p125_p13, %p119_p10 }
  0x25   :  { %129 = shalt.err (!%p126_p0)
}
  0x26   :  { %65 = dma.vmem_to_hbm [thread:$0]  %s60_s21, 256, %s185_s2, [#allocation4], %s145_s12, %s145_s12, %s146_s13  }
  0x27   :  { %142 = dma.done.wait [#allocation4], 256  }
  0x28   :  { %143 = vsyncadd [#allocation4], 4294967040 }
  0x29   :  { %69 = vsyncpa [#allocation3], 1 }
  0x2a   :  { %70 = vsyncpa [#allocation6], 1 }
  0x2b   :  { %71 = vsyncpa [#allocation4], 1 }

</bundles_post_ra>
